<compile_context>
chip_gen: v7x
topology: tpu7x:2x2x1
jax: 0.10.0
libtpu: 0.0.40
codegen_flags: <defaults>
</compile_context>

<pallas_src>
import functools

import jax
import jax.numpy as jnp
from jax.experimental import pallas as pl
from jax.experimental.pallas import tpu as pltpu

LN_EPS = 1e-5
LANE = 128
SUBLANE = 8


def _round_up(n, m):
    return ((n + m - 1) // m) * m


def mean_pooling_mil_kernel(x_ref, w_emb_ref, b_emb_ref, ln_g_ref, ln_b_ref,
                            w_cls_ref, b_cls_ref, y_ref, h_ref):
    x = x_ref[...]                                                     # (tile_n, L)

    # --- embedding Linear (dropout is identity in eval mode) ---
    h = jnp.dot(x, w_emb_ref[...],
                preferred_element_type=jnp.float32) + b_emb_ref[...]   # (tile_n, L)

    # --- LayerNorm over the feature dim (biased variance, like PyTorch) ---
    mu = jnp.mean(h, axis=-1, keepdims=True)
    xc = h - mu
    var = jnp.mean(xc * xc, axis=-1, keepdims=True)
    hn = xc * jax.lax.rsqrt(var + LN_EPS)
    hn = hn * ln_g_ref[...] + ln_b_ref[...]                            # (tile_n, L)
    h_ref[...] = hn.astype(h_ref.dtype)

    # --- classifier (output padded to 128 lanes -> lane-dense stores) ---
    y = jnp.dot(hn, w_cls_ref[...],
                preferred_element_type=jnp.float32) + b_cls_ref[...]   # (tile_n, C_pad)
    y_ref[...] = y.astype(y_ref.dtype)


def _pick_tile_n(n, l, c_pad, requested):
    # Keep double-buffered x/h/y tiles well inside the default scoped-VMEM
    # window; weights are resident once and are small relative to this budget.
    budget = 20 * 1024 * 1024
    per_row = 4 * (l + l + c_pad)                     # f32 bytes per row of x+h+y
    cap = max(SUBLANE, (budget // (2 * per_row)) // SUBLANE * SUBLANE)
    tile = min(requested, cap, _round_up(n, SUBLANE))
    return max(SUBLANE, tile)


@functools.partial(jax.jit, static_argnames=("tile_n",))
def mean_pooling_mil_forward(x, params, *, tile_n=512):
    """x: (N, L) instance features. Returns (y (N, C), h (N, L))."""
    N, L = x.shape
    C = params["b_cls"].shape[-1]
    C_pad = _round_up(max(C, LANE), LANE)

    tile_n = _pick_tile_n(N, L, C_pad, tile_n)
    n_pad = _round_up(N, tile_n)
    grid = (n_pad // tile_n,)

    x_p = x if n_pad == N else jnp.pad(x, ((0, n_pad - N), (0, 0)))
    w_cls_p = jnp.pad(params["w_cls"], ((0, 0), (0, C_pad - C)))
    b_cls_p = jnp.pad(params["b_cls"], ((0, 0), (0, C_pad - C)))

    def const_spec(shape):
        # Constant block index -> the block stays resident in VMEM across steps.
        return pl.BlockSpec(shape, lambda i: (0, 0))

    flops = 2 * n_pad * L * L + 2 * n_pad * L * C_pad + 8 * n_pad * L
    bytes_accessed = 4 * (n_pad * (2 * L + C_pad) + L * (L + C_pad) + 4 * L + C_pad)
    cost = pl.CostEstimate(flops=flops, transcendentals=n_pad,
                           bytes_accessed=bytes_accessed)

    y_pad, h_pad = pl.pallas_call(
        mean_pooling_mil_kernel,
        out_shape=(jax.ShapeDtypeStruct((n_pad, C_pad), jnp.float32),
                   jax.ShapeDtypeStruct((n_pad, L), jnp.float32)),
        grid=grid,
        in_specs=[
            pl.BlockSpec((tile_n, L), lambda i: (i, 0)),   # x (streamed over N)
            const_spec((L, L)),                            # w_emb
            const_spec((1, L)),                            # b_emb
            const_spec((1, L)),                            # ln_g
            const_spec((1, L)),                            # ln_b
            const_spec((L, C_pad)),                        # w_cls (lane-padded)
            const_spec((1, C_pad)),                        # b_cls (lane-padded)
        ],
        out_specs=(pl.BlockSpec((tile_n, C_pad), lambda i: (i, 0)),
                   pl.BlockSpec((tile_n, L), lambda i: (i, 0))),
        compiler_params=pltpu.CompilerParams(
            dimension_semantics=("parallel",)),
        cost_estimate=cost,
    )(x_p, params["w_emb"], params["b_emb"], params["ln_g"], params["ln_b"],
      w_cls_p, b_cls_p)

    return y_pad[:N, :C], h_pad[:N, :]


def mean_pooling_mil_reference(x, p):
    """Pure-JAX reference of the same forward (for correctness check)."""
    hp = jax.lax.Precision.HIGHEST
    h = jnp.dot(x, p["w_emb"], precision=hp) + p["b_emb"]
    mu = jnp.mean(h, axis=-1, keepdims=True)
    var = jnp.mean(jnp.square(h - mu), axis=-1, keepdims=True)
    hn = (h - mu) / jnp.sqrt(var + LN_EPS) * p["ln_g"] + p["ln_b"]
    y = jnp.dot(hn, p["w_cls"], precision=hp) + p["b_cls"]
    return y, hn


def init_params(key, L, C):
    ks = jax.random.split(key, 4)
    sc = 0.1
    return {
        "w_emb": sc * jax.random.normal(ks[0], (L, L), jnp.float32),
        "b_emb": sc * jax.random.normal(ks[1], (1, L), jnp.float32),
        "ln_g":  jnp.ones((1, L), jnp.float32),
        "ln_b":  jnp.zeros((1, L), jnp.float32),
        "w_cls": sc * jax.random.normal(ks[2], (L, C), jnp.float32),
        "b_cls": sc * jax.random.normal(ks[3], (1, C), jnp.float32),
    }


if __name__ == "__main__":
    # cfgs: feature_dim L = 32, num_classes C = 4; bag of N = 40 instances.
    # tile_n = 16 exercises a 3-step grid (40 -> padded to 48) at small shapes.
    N, L, C = 40, 32, 4

    key = jax.random.PRNGKey(0)
    k_x, k_p = jax.random.split(key)

    x = jax.random.normal(k_x, (N, L), jnp.float32)
    params = init_params(k_p, L, C)

    y, h = mean_pooling_mil_forward(x, params, tile_n=16)
    y = jax.block_until_ready(y)
    h = jax.block_until_ready(h)

    y_ref, h_ref = mean_pooling_mil_reference(x, params)
    assert y.shape == (N, C) and h.shape == (N, L)
    assert jnp.allclose(y, y_ref, atol=1e-4, rtol=1e-4)
    assert jnp.allclose(h, h_ref, atol=1e-4, rtol=1e-4)

    print("KERNEL_OK")
</pallas_src>

<mosaic_0001>
module attributes {stable_mosaic.version = 11 : i64} {
  func.func @mean_pooling_mil_kernel(%arg0: i32, %arg1: memref<16x32xf32, #tpu.memory_space<vmem>>, %arg2: memref<32x32xf32, #tpu.memory_space<vmem>>, %arg3: memref<1x32xf32, #tpu.memory_space<vmem>>, %arg4: memref<1x32xf32, #tpu.memory_space<vmem>>, %arg5: memref<1x32xf32, #tpu.memory_space<vmem>>, %arg6: memref<32x128xf32, #tpu.memory_space<vmem>>, %arg7: memref<1x128xf32, #tpu.memory_space<vmem>>, %arg8: memref<16x128xf32, #tpu.memory_space<vmem>>, %arg9: memref<16x32xf32, #tpu.memory_space<vmem>>) attributes {dimension_semantics = [#tpu.dimension_semantics<parallel>], iteration_bounds = array<i64: 3>, scalar_prefetch = 0 : i64, scratch_operands = 0 : i64, tpu.core_type = #tpu.core_type<tc>, window_params = [{transform_indices = @transform_0, window_bounds = array<i64: 16, 32>}, {pipeline_mode = #tpu.pipeline_mode<synchronous>, transform_indices = @transform_1, window_bounds = array<i64: 32, 32>}, {pipeline_mode = #tpu.pipeline_mode<synchronous>, transform_indices = @transform_2, window_bounds = array<i64: 1, 32>}, {pipeline_mode = #tpu.pipeline_mode<synchronous>, transform_indices = @transform_3, window_bounds = array<i64: 1, 32>}, {pipeline_mode = #tpu.pipeline_mode<synchronous>, transform_indices = @transform_4, window_bounds = array<i64: 1, 32>}, {pipeline_mode = #tpu.pipeline_mode<synchronous>, transform_indices = @transform_5, window_bounds = array<i64: 32, 128>}, {pipeline_mode = #tpu.pipeline_mode<synchronous>, transform_indices = @transform_6, window_bounds = array<i64: 1, 128>}, {transform_indices = @transform_7, window_bounds = array<i64: 16, 128>}, {transform_indices = @transform_8, window_bounds = array<i64: 16, 32>}]} {
    %c0 = arith.constant 0 : index
    %c0_0 = arith.constant 0 : index
    %0 = vector.load %arg1[%c0, %c0_0] : memref<16x32xf32, #tpu.memory_space<vmem>>, vector<16x32xf32>
    %c0_1 = arith.constant 0 : index
    %c0_2 = arith.constant 0 : index
    %1 = vector.load %arg2[%c0_1, %c0_2] : memref<32x32xf32, #tpu.memory_space<vmem>>, vector<32x32xf32>
    %cst = arith.constant dense<0.000000e+00> : vector<16x32xf32>
    %2 = tpu.matmul %0, %1, %cst {dimension_numbers = #tpu.dot_dimension_numbers<[1], [0], [0], [1], [0, 0, 1, 1], [], []>} : vector<16x32xf32>, vector<32x32xf32>, vector<16x32xf32> -> vector<16x32xf32>
    %c0_3 = arith.constant 0 : index
    %c0_4 = arith.constant 0 : index
    %3 = vector.load %arg3[%c0_3, %c0_4] : memref<1x32xf32, #tpu.memory_space<vmem>>, vector<1x32xf32>
    %4 = vector.broadcast %3 : vector<1x32xf32> to vector<16x32xf32>
    %5 = arith.addf %2, %4 : vector<16x32xf32>
    %cst_5 = arith.constant dense<0.000000e+00> : vector<16xf32>
    %6 = vector.multi_reduction <add>, %5, %cst_5 [1] : vector<16x32xf32> to vector<16xf32>
    %7 = vector.shape_cast %6 : vector<16xf32> to vector<16x1xf32>
    %cst_6 = arith.constant 3.200000e+01 : f32
    %8 = vector.broadcast %cst_6 : f32 to vector<16x1xf32>
    %9 = arith.divf %7, %8 : vector<16x1xf32>
    %10 = vector.broadcast %9 : vector<16x1xf32> to vector<16x32xf32>
    %11 = arith.subf %5, %10 : vector<16x32xf32>
    %12 = arith.mulf %11, %11 : vector<16x32xf32>
    %cst_7 = arith.constant dense<0.000000e+00> : vector<16xf32>
    %13 = vector.multi_reduction <add>, %12, %cst_7 [1] : vector<16x32xf32> to vector<16xf32>
    %14 = vector.shape_cast %13 : vector<16xf32> to vector<16x1xf32>
    %cst_8 = arith.constant 3.200000e+01 : f32
    %15 = vector.broadcast %cst_8 : f32 to vector<16x1xf32>
    %16 = arith.divf %14, %15 : vector<16x1xf32>
    %cst_9 = arith.constant 9.99999974E-6 : f32
    %17 = vector.broadcast %cst_9 : f32 to vector<16x1xf32>
    %18 = arith.addf %16, %17 : vector<16x1xf32>
    %19 = math.rsqrt %18 : vector<16x1xf32>
    %20 = vector.broadcast %19 : vector<16x1xf32> to vector<16x32xf32>
    %21 = arith.mulf %11, %20 : vector<16x32xf32>
    %c0_10 = arith.constant 0 : index
    %c0_11 = arith.constant 0 : index
    %22 = vector.load %arg4[%c0_10, %c0_11] : memref<1x32xf32, #tpu.memory_space<vmem>>, vector<1x32xf32>
    %23 = vector.broadcast %22 : vector<1x32xf32> to vector<16x32xf32>
    %24 = arith.mulf %21, %23 : vector<16x32xf32>
    %c0_12 = arith.constant 0 : index
    %c0_13 = arith.constant 0 : index
    %25 = vector.load %arg5[%c0_12, %c0_13] : memref<1x32xf32, #tpu.memory_space<vmem>>, vector<1x32xf32>
    %26 = vector.broadcast %25 : vector<1x32xf32> to vector<16x32xf32>
    %27 = arith.addf %24, %26 : vector<16x32xf32>
    %c0_14 = arith.constant 0 : index
    %c0_15 = arith.constant 0 : index
    %28 = vector.load %arg9[%c0_14, %c0_15] : memref<16x32xf32, #tpu.memory_space<vmem>>, vector<16x32xf32>
    tpu.vector_store %arg9[%c0_14, %c0_15], %27 {strides = array<i32>} : memref<16x32xf32, #tpu.memory_space<vmem>>, vector<16x32xf32>,
    %c0_16 = arith.constant 0 : index
    %c0_17 = arith.constant 0 : index
    %29 = vector.load %arg6[%c0_16, %c0_17] : memref<32x128xf32, #tpu.memory_space<vmem>>, vector<32x128xf32>
    %cst_18 = arith.constant dense<0.000000e+00> : vector<16x128xf32>
    %30 = tpu.matmul %27, %29, %cst_18 {dimension_numbers = #tpu.dot_dimension_numbers<[1], [0], [0], [1], [0, 0, 1, 1], [], []>} : vector<16x32xf32>, vector<32x128xf32>, vector<16x128xf32> -> vector<16x128xf32>
    %c0_19 = arith.constant 0 : index
    %c0_20 = arith.constant 0 : index
    %31 = vector.load %arg7[%c0_19, %c0_20] : memref<1x128xf32, #tpu.memory_space<vmem>>, vector<1x128xf32>
    %32 = vector.broadcast %31 : vector<1x128xf32> to vector<16x128xf32>
    %33 = arith.addf %30, %32 : vector<16x128xf32>
    %c0_21 = arith.constant 0 : index
    %c0_22 = arith.constant 0 : index
    %34 = vector.load %arg8[%c0_21, %c0_22] : memref<16x128xf32, #tpu.memory_space<vmem>>, vector<16x128xf32>
    tpu.vector_store %arg8[%c0_21, %c0_22], %33 {strides = array<i32>} : memref<16x128xf32, #tpu.memory_space<vmem>>, vector<16x128xf32>,
    return
  }
  func.func @transform_0(%arg0: i32) -> (i32, i32) {
    %c0_i32 = arith.constant 0 : i32
    %c0_i32_0 = arith.constant 0 : i32
    return %arg0, %c0_i32 : i32, i32
  }
  func.func @transform_1(%arg0: i32) -> (i32, i32) {
    %c0_i32 = arith.constant 0 : i32
    %c0_i32_0 = arith.constant 0 : i32
    %c0_i32_1 = arith.constant 0 : i32
    return %c0_i32, %c0_i32_0 : i32, i32
  }
  func.func @transform_2(%arg0: i32) -> (i32, i32) {
    %c0_i32 = arith.constant 0 : i32
    %c0_i32_0 = arith.constant 0 : i32
    %c0_i32_1 = arith.constant 0 : i32
    return %c0_i32, %c0_i32_0 : i32, i32
  }
  func.func @transform_3(%arg0: i32) -> (i32, i32) {
    %c0_i32 = arith.constant 0 : i32
    %c0_i32_0 = arith.constant 0 : i32
    %c0_i32_1 = arith.constant 0 : i32
    return %c0_i32, %c0_i32_0 : i32, i32
  }
  func.func @transform_4(%arg0: i32) -> (i32, i32) {
    %c0_i32 = arith.constant 0 : i32
    %c0_i32_0 = arith.constant 0 : i32
    %c0_i32_1 = arith.constant 0 : i32
    return %c0_i32, %c0_i32_0 : i32, i32
  }
  func.func @transform_5(%arg0: i32) -> (i32, i32) {
    %c0_i32 = arith.constant 0 : i32
    %c0_i32_0 = arith.constant 0 : i32
    %c0_i32_1 = arith.constant 0 : i32
    return %c0_i32, %c0_i32_0 : i32, i32
  }
  func.func @transform_6(%arg0: i32) -> (i32, i32) {
    %c0_i32 = arith.constant 0 : i32
    %c0_i32_0 = arith.constant 0 : i32
    %c0_i32_1 = arith.constant 0 : i32
    return %c0_i32, %c0_i32_0 : i32, i32
  }
  func.func @transform_7(%arg0: i32) -> (i32, i32) {
    %c0_i32 = arith.constant 0 : i32
    %c0_i32_0 = arith.constant 0 : i32
    return %arg0, %c0_i32 : i32, i32
  }
  func.func @transform_8(%arg0: i32) -> (i32, i32) {
    %c0_i32 = arith.constant 0 : i32
    %c0_i32_0 = arith.constant 0 : i32
    return %arg0, %c0_i32 : i32, i32
  }
}

</mosaic_0001>

<bundles_post_ra>
// kernel: mean_pooling_mil_forward.1
= control target key start
LH: loop header
LB: loop body
LE: loop exit
PB: predicated region body
PF: predicated region fallthrough
CT: control target
= control target key end

     0   :  { %s785_s27 = smov 0   ;;  %s856_s0 = inlined_call_operand.vmem [shape: f32[48,32], index: 0, kind: input, shape index: {}]   ;;  %s857_s1 = inlined_call_operand.vmem [shape: f32[32,32], index: 1, kind: input, shape index: {}]   ;;  %s858_s2 = inlined_call_operand.vmem [shape: f32[1,32], index: 2, kind: input, shape index: {}]   ;;  %s859_s3 = inlined_call_operand.vmem [shape: f32[1,32], index: 3, kind: input, shape index: {}]   ;;  %s860_s4 = inlined_call_operand.vmem [shape: f32[1,32], index: 4, kind: input, shape index: {}]   ;;  %s861_s5 = inlined_call_operand.vmem [shape: f32[32,128], index: 5, kind: input, shape index: {}]   ;;  %s862_s6 = inlined_call_operand.vmem [shape: f32[1,128], index: 6, kind: input, shape index: {}]   ;;  %s863_s7 = inlined_call_operand.vmem [shape: f32[48,128], index: 7, kind: output, shape index: {0}]   ;;  %s864_s8 = inlined_call_operand.vmem [shape: f32[48,32], index: 8, kind: output, shape index: {1}]  }
   0x1 LB: > { %s649_s28 = sadd.s32 4294967295, %s738_s27   ;;  %p653_p0 = scmp.ge.s32.totalorder %s738_s27, 1  ;;  %s738_s27 = sphi %s785_s27, %s19_s27  }
   0x2   : > { %p266_p1 = scmp.lt.s32.totalorder %s738_s27, 4 }
   0x4   : > { %p267_p2 = pnand %p653_p0, %p266_p1 }
   0x5   : > { %v325_v0 = vld [vmem:[%s857_s1] sm:$0xff] (!%p267_p2)  ;;  %v326_v1 = vld [vmem:[%s857_s1 + $0x8] sm:$0xff] (!%p267_p2)  ;;  %v327_v2 = vld [vmem:[%s857_s1 + $0x10] sm:$0xff] (!%p267_p2)  ;;  %s654_s13 = sshll.u32 (!%p267_p2), %s649_s28, 1  ;;  %vm336_vm0 = vcmask (!%p267_p2), 261120  }
   0x6   : > { %270 = sbr.rel (%p267_p2) target bundleno = 766 (0x2fe), region = 48  ;;  %v704_v3 = vpack.c.bf16 (!%p267_p2), %v326_v1, %v325_v0  ;;  %v328_v4 = vld [vmem:[%s857_s1 + $0x18] sm:$0xff] (!%p267_p2)  ;;  %p306_p3 = scmp.lt.s32.totalorder (!%p267_p2), %s654_s13, 5  ;;  %v660_v8 = vld [vmem:[%s858_s2] ss:$0 sm:$0xff] (!%p267_p2)  ;;  %v466_v26 = vld [vmem:[%s861_s5 + $0x8] sm:$0xff] (!%p267_p2) }
   0x7   : > { %v708_v5 = vpack.c.bf16 (!%p267_p2), %v328_v4, %v327_v2  ;;  %v465_v25 = vld [vmem:[%s861_s5] sm:$0xff] (!%p267_p2)  ;;  %v467_v27 = vld [vmem:[%s861_s5 + $0x10] sm:$0xff] (!%p267_p2)  ;;  %v468_v29 = vld [vmem:[%s861_s5 + $0x18] sm:$0xff] (!%p267_p2) }
   0x8   : > { %705 = vmatprep.subr.bf16.mxu0 (!%p267_p2), %v704_v3  ;;  %v712_v28 = vpack.c.bf16 (!%p267_p2), %v466_v26, %v465_v25  ;;  %v716_v30 = vpack.c.bf16 (!%p267_p2), %v468_v29, %v467_v27  ;;  %v663_v38 = vld [vmem:[%s859_s3] ss:$0 sm:$0xff] (!%p267_p2) }
   0x9   : > { %707 = vmatpush3.bf16.msra.mxu0 (!%p267_p2), %v704_v3  ;;  %v664_v40 = vld [vmem:[%s860_s4] ss:$0 sm:$0xff] (!%p267_p2) }
   0xa   : > { %709 = vmatprep.subr.bf16.mxu0 (!%p267_p2), %v708_v5  ;;  %713 = vmatprep.subr.bf16.mxu1 (!%p267_p2), %v712_v28  ;;  %v665_v47 = vld [vmem:[%s862_s6] ss:$0 sm:$0xff] (!%p267_p2) }
   0xb   : > { %715 = vmatpush3.bf16.msra.mxu1 (!%p267_p2), %v712_v28 }
   0xc   : > { %717 = vmatprep.subr.bf16.mxu1 (!%p267_p2), %v716_v30 }
   0xd   : > { %s866_s13 = smov (!%p306_p3, %s654_s13), 5  ;;  %711 = vmatpush3.bf16.msra.mxu0 %v708_v5 }
   0xe   : > { %s805_s16 = sshll.u32 %s866_s13, 3 }
   0xf   : > { %s309_s19 = scalar_lea.vmem %s856_s0, %s805_s16  ;;  %719 = vmatpush3.bf16.msra.mxu1 %v716_v30  ;;  %s321_s15 = scalar_lea.vmem %s864_s8, %s805_s16 }
  0x10   : > { %v323_v6 = vld [vmem:[%s309_s19] sm:$0xff]  ;;  %v324_v7 = vld [vmem:[%s309_s19 + $0x8] sm:$0xff]  ;;  %s315_s21 = scalar_lea.vmem %s863_s7, %s805_s16 }
  0x11   : > { %690 = vmatprep.mubr.msk.f32.mxu0 %vm336_vm0, %v323_v6 }
  0x12   : > { %691 = vmatmul.mubr.msk.f32.vlgmr.msra.gmra.mrb[0].mxu0 %vm336_vm0, %v324_v7 }
  0xe5   : > { %v692_v9 = vpop.f32.mrb[0].mxu0 }
  0xe6   : > { %v409_v10 = vpop.f32.mrb[1].mxu0  ;;  %v415_v12 = vadd.f32 %v692_v9, %v660_v8 }
  0xe7   : > { %v410_v11 = vadd.f32 %v660_v8, %v409_v10 }
  0xe8   : > { %v421_v14 = vsel %vm336_vm0, %v415_v12, 0.0 }
  0xe9   : > { %v418_v13 = vsel %vm336_vm0, %v410_v11, 0.0 }
  0xea   : > { %419 = vadd.xlane.f32.xlu0 %v418_v13 }
  0xee   : > { %422 = vadd.xlane.f32.xlu0 %v421_v14 }
 0x177   : > { %v420_v15 = vpop.xlane.xlu0 %419 }
 0x178   : > { %v425_v16 = vmul.f32 0.03125, %v420_v15 }
 0x17a   : > { %v427_v17 = vsub.f32 %v410_v11, %v425_v16 }
 0x17b   : > { %v423_v18 = vpop.xlane.xlu0 %422 }
 0x17c   : > { %v426_v19 = vmul.f32 0.03125, %v423_v18  ;;  %v429_v20 = vmul.f32 %v427_v17, %v427_v17 }
 0x17e   : > { %v428_v21 = vsub.f32 %v415_v12, %v426_v19  ;;  %v431_v22 = vsel %vm336_vm0, %v429_v20, 0.0 }
 0x17f   : > { %432 = vadd.xlane.f32.xlu1 %v431_v22 }
 0x180   : > { %v430_v23 = vmul.f32 %v428_v21, %v428_v21 }
 0x182   : > { %v434_v24 = vsel %vm336_vm0, %v430_v23, 0.0 }
 0x183   : > { %435 = vadd.xlane.f32.xlu1 %v434_v24 }
 0x20c   : > { %v433_v31 = vpop.xlane.xlu1 %432 }
 0x20d   : > { %v437_v32 = vmul.f32 0.03125, %v433_v31 }
 0x20f   : > { %v439_v33 = vadd.f32 1e-05, %v437_v32 }
 0x210   : > { %v436_v34 = vpop.xlane.xlu1 %435 }
 0x211   : > { %728 = vrsqrt.f32 %v439_v33  ;;  %v438_v35 = vmul.f32 0.03125, %v436_v34 }
 0x213   : > { %v440_v36 = vadd.f32 1e-05, %v438_v35 }
 0x215   : > { %730 = vrsqrt.f32 %v440_v36 }
 0x21b   : > { %v729_v37 = vpop.eup %728 }
 0x21c   : > { %v443_v39 = vmul.f32 %v729_v37, %v427_v17 }
 0x21e   : > { %v452_v41 = vmul.f32 %v663_v38, %v443_v39 }
 0x21f   : > { %v731_v42 = vpop.eup %730 }
 0x220   : > { %v444_v43 = vmul.f32 %v731_v42, %v428_v21  ;;  %v461_v44 = vadd.f32 %v664_v40, %v452_v41 }
 0x222   : > { %v453_v45 = vmul.f32 %v663_v38, %v444_v43  ;;  %463 = vst.msk [vmem:[%s321_s15] sm:$0xff] %vm336_vm0, %v461_v44  ;;  %701 = vmatprep.mubr.msk.f32.mxu1 %vm336_vm0, %v461_v44 }
 0x224   : > { %v462_v46 = vadd.f32 %v664_v40, %v453_v45 }
 0x226   : > { %464 = vst.msk [vmem:[%s321_s15 + $0x8] sm:$0xff] %vm336_vm0, %v462_v46  ;;  %702 = vmatmul.mubr.msk.f32.vlgmr.msra.gmra.mrb[0].mxu1 %vm336_vm0, %v462_v46 }
 0x2f9   : > { %v703_v48 = vpop.f32.mrb[0].mxu1 }
 0x2fa   : > { %v548_v49 = vpop.f32.mrb[1].mxu1  ;;  %v554_v51 = vadd.f32 %v703_v48, %v665_v47 }
 0x2fb   : > { %v549_v50 = vadd.f32 %v665_v47, %v548_v49 }
 0x2fc   : > { %558 = vst [vmem:[%s315_s21 + $0x8] sm:$0xff] %v554_v51 }
 0x2fd   : > { %557 = vst [vmem:[%s315_s21] sm:$0xff] %v549_v50 }
 0x2fe PF: > { %s19_s27 = sadd.s32 1, %s738_s27  }
 0x2ff   : > { %p16_p4 = scmp.ge.s32.totalorder %s19_s27, 5  }
 0x301   :  { %18 = sbr.rel (!%p16_p4) target bundleno = 1 (0x1), region = 90 }

</bundles_post_ra>
